<compile_context>
chip_gen: v6e
topology: v6e:2x2x1
jax: 0.10.0
libtpu: 0.0.40
codegen_flags: <defaults>
</compile_context>

<pallas_src>
import jax
import jax.numpy as jnp
from jax.experimental import pallas as pl
from jax.experimental.pallas import tpu as pltpu


# ----------------------------------------------------------------------------
# FSDP-style shard / all-gather (parameter reconstruction) -- plain JAX glue
# ----------------------------------------------------------------------------
def shard_tensor(t: jax.Array, world_size: int):
    """Evenly shard a tensor across `world_size` simulated ranks with padding.

    Returns (shards, metadata); shards has shape (world_size, shard_size),
    metadata = (original_numel, original_shape, shard_size, padding) --
    mirroring `shard_tensor` in the PyTorch module.
    """
    original_shape = t.shape
    original_numel = t.size
    padded_numel = (original_numel + world_size - 1) // world_size * world_size
    padding = padded_numel - original_numel
    flat = t.reshape(-1)
    if padding > 0:
        flat = jnp.concatenate([flat, jnp.zeros((padding,), dtype=t.dtype)])
    shard_size = padded_numel // world_size
    shards = flat.reshape(world_size, shard_size)
    metadata = (original_numel, original_shape, shard_size, padding)
    return shards, metadata


def fsdp_all_gather(shards: jax.Array, metadata):
    """Reconstruct the full parameter from its shards (all-gather + trim pad).

    Because shards are stored in the kernel-ready layout/dtype, this is a pure
    reshape (+ a slice when padding > 0): no transpose, no cast.
    """
    original_numel, original_shape, _, padding = metadata
    flat = shards.reshape(-1)
    if padding > 0:
        flat = flat[:original_numel]
    return flat.reshape(original_shape)


# ----------------------------------------------------------------------------
# VMEM planning (sized for v7x's 64 MiB per TensorCore)
# ----------------------------------------------------------------------------
_VMEM_BUDGET_BYTES = 48 * 1024 * 1024  # headroom under v7x's 64 MiB


def _pick_tm(B: int) -> int:
    """Batch-tile size: prefer >= 2 batch tiles so the 'parallel' axis splits
    across v7x's two TensorCores, with the largest MXU-friendly tile."""
    for c in (512, 256, 128):
        if B % c == 0 and B // c >= 2:
            return c
    for c in (512, 256, 128):
        if B % c == 0:
            return c
    return B


def _fused_vmem_bytes(tm, D, H, O, xb, wb, bb, ob):
    return (2 * tm * D * xb        # x tile, double-buffered
            + D * H * wb           # w1 resident, Buffered(1)
            + H * bb + O * bb      # b1, b2 resident, Buffered(1)
            + H * O * wb           # w2 resident, Buffered(1)
            + 2 * tm * O * ob)     # out tile, double-buffered


def _ktiled_vmem_bytes(tm, tk, D, H, O, xb, wb, bb, ob):
    return (2 * tm * tk * xb       # x tile, double-buffered
            + 2 * tk * H * wb      # w1 tile, double-buffered (streamed over k)
            + H * bb + O * bb      # b1, b2 resident, Buffered(1)
            + H * O * wb           # w2 resident, Buffered(1)
            + tm * H * 4           # f32 hidden accumulator scratch
            + 2 * tm * O * ob)     # out tile, double-buffered


# ----------------------------------------------------------------------------
# Pallas kernels: fused 2-layer MLP forward of the wrapped module
# ----------------------------------------------------------------------------
def _mlp_fused_kernel(x_ref, w1_ref, b1_ref, w2_ref, b2_ref, o_ref):
    """Single contraction step: full D in one tile, weights VMEM-resident."""
    h = jnp.dot(x_ref[...], w1_ref[...], preferred_element_type=jnp.float32)
    h = jnp.maximum(h + b1_ref[...], 0.0)                    # bias + ReLU, f32
    y = jnp.dot(h.astype(w2_ref.dtype), w2_ref[...],          # bf16 MXU
                preferred_element_type=jnp.float32) + b2_ref[...]
    o_ref[...] = y.astype(o_ref.dtype)


def _mlp_ktiled_kernel(x_ref, w1_ref, b1_ref, w2_ref, b2_ref, o_ref, h_acc):
    """k-tiled contraction with a VMEM f32 accumulator for the hidden act."""
    k = pl.program_id(1)

    @pl.when(k == 0)
    def _():
        h_acc[...] = jnp.zeros_like(h_acc)

    # x tile (tm, tk) bf16, w1 tile (tk, H) bf16 (already (in,out) layout,
    # no in-kernel transpose); accumulate in f32.
    h_acc[...] += jnp.dot(x_ref[...], w1_ref[...],
                          preferred_element_type=jnp.float32)

    @pl.when(k == pl.num_programs(1) - 1)
    def _():
        h = jnp.maximum(h_acc[...] + b1_ref[...], 0.0)
        y = jnp.dot(h.astype(w2_ref.dtype), w2_ref[...],
                    preferred_element_type=jnp.float32) + b2_ref[...]
        o_ref[...] = y.astype(o_ref.dtype)


def mlp_forward_pallas(x, w1_t, b1, w2_t, b2, *, tm=None, tk=None, fused=None,
                       out_dtype=jnp.bfloat16,
                       vmem_budget=_VMEM_BUDGET_BYTES):
    """y = relu(x @ w1_t + b1) @ w2_t + b2.

    x: (B, D) bf16; w1_t: (D, H) bf16; w2_t: (H, O) bf16; b1: (1, H) f32;
    b2: (1, O) f32.  Output: (B, O) out_dtype (default bf16).
    """
    B, D = x.shape
    Dw, H = w1_t.shape
    Hw, O = w2_t.shape
    assert D == Dw and H == Hw, "weight shapes inconsistent with input"
    assert b1.shape == (1, H) and b2.shape == (1, O)

    xb = x.dtype.itemsize
    wb = w1_t.dtype.itemsize
    bb = b1.dtype.itemsize
    ob = jnp.dtype(out_dtype).itemsize

    if tm is None:
        tm = _pick_tm(B)
    tm = min(tm, B)

    if fused is None:
        fused = ((tk is None or tk == D) and
                 _fused_vmem_bytes(tm, D, H, O, xb, wb, bb, ob) <= vmem_budget)

    if fused:
        tk = D
        footprint = _fused_vmem_bytes(tm, D, H, O, xb, wb, bb, ob)
    else:
        if tk is None:
            for c in (512, 256, 128):
                if D % c == 0 and _ktiled_vmem_bytes(
                        tm, c, D, H, O, xb, wb, bb, ob) <= vmem_budget:
                    tk = c
                    break
            else:
                # TODO(synk): tile H as an extra 'arbitrary' axis for layers
                # this large instead of holding the full (tm,H) f32 hidden.
                raise ValueError("MLP too large for the current VMEM plan")
        footprint = _ktiled_vmem_bytes(tm, tk, D, H, O, xb, wb, bb, ob)

    # TODO(synk): masked edge tiles (pl.cdiv) for non-multiple shapes.
    assert B % tm == 0 and D % tk == 0, "batch / contraction must tile evenly"

    # vmem limit derived from the actual footprint, capped v7x-safe (64 MiB).
    vmem_limit = int(min(60 * 2**20,
                         max(footprint * 5 // 4 + (2 << 20), 16 << 20)))

    if fused:
        cost = pl.CostEstimate(
            flops=2 * B * (D * H + H * O),
            transcendentals=0,
            bytes_accessed=(B * D * xb + D * H * wb + H * O * wb
                            + (H + O) * bb + B * O * ob),
        )
        return pl.pallas_call(
            _mlp_fused_kernel,
            out_shape=jax.ShapeDtypeStruct((B, O), out_dtype),
            grid_spec=pltpu.PrefetchScalarGridSpec(
                num_scalar_prefetch=0,
                grid=(B // tm,),
                in_specs=[
                    pl.BlockSpec((tm, D), lambda i: (i, 0)),           # x
                    pl.BlockSpec((D, H), lambda i: (0, 0),             # w1 resident
                                 pipeline_mode=pl.Buffered(1)),
                    pl.BlockSpec((1, H), lambda i: (0, 0),             # b1
                                 pipeline_mode=pl.Buffered(1)),
                    pl.BlockSpec((H, O), lambda i: (0, 0),             # w2 resident
                                 pipeline_mode=pl.Buffered(1)),
                    pl.BlockSpec((1, O), lambda i: (0, 0),             # b2
                                 pipeline_mode=pl.Buffered(1)),
                ],
                out_specs=pl.BlockSpec((tm, O), lambda i: (i, 0)),
            ),
            compiler_params=pltpu.CompilerParams(
                dimension_semantics=("parallel",),   # megacore-shardable
                vmem_limit_bytes=vmem_limit,
            ),
            cost_estimate=cost,
        )(x, w1_t, b1, w2_t, b2)

    # ---- k-tiled fallback (large D*H) ----
    cost = pl.CostEstimate(
        flops=2 * B * (D * H + H * O),
        transcendentals=0,
        # w1 is re-streamed once per batch tile in this schedule.
        bytes_accessed=(B * D * xb + (B // tm) * D * H * wb + H * O * wb
                        + (H + O) * bb + B * O * ob),
    )
    return pl.pallas_call(
        _mlp_ktiled_kernel,
        out_shape=jax.ShapeDtypeStruct((B, O), out_dtype),
        grid_spec=pltpu.PrefetchScalarGridSpec(
            num_scalar_prefetch=0,
            grid=(B // tm, D // tk),
            in_specs=[
                pl.BlockSpec((tm, tk), lambda i, k: (i, k)),           # x
                pl.BlockSpec((tk, H), lambda i, k: (k, 0)),            # w1 streamed
                pl.BlockSpec((1, H), lambda i, k: (0, 0),              # b1
                             pipeline_mode=pl.Buffered(1)),
                pl.BlockSpec((H, O), lambda i, k: (0, 0),              # w2 resident
                             pipeline_mode=pl.Buffered(1)),
                pl.BlockSpec((1, O), lambda i, k: (0, 0),              # b2
                             pipeline_mode=pl.Buffered(1)),
            ],
            out_specs=pl.BlockSpec((tm, O), lambda i, k: (i, 0)),
            scratch_shapes=[pltpu.VMEM((tm, H), jnp.float32)],
        ),
        compiler_params=pltpu.CompilerParams(
            # Batch tiles independent (megacore); contraction axis last.
            dimension_semantics=("parallel", "arbitrary"),
            vmem_limit_bytes=vmem_limit,
        ),
        cost_estimate=cost,
    )(x, w1_t, b1, w2_t, b2)


# ----------------------------------------------------------------------------
# SimpleFSDP-equivalent wrapper
# ----------------------------------------------------------------------------
class SimpleFSDPJax:
    """JAX/Pallas analogue of SimpleFSDP wrapping a 2-layer MLP.

    Parameters are stored only in sharded form, already in the kernel-ready
    layout/dtype (weights transposed to (in,out) bf16, biases (1,N) f32) so
    the per-forward all-gather is a pure reshape.  The jitted forward gathers
    them, runs the fused Pallas MLP and drops the gathered copies on return
    (free_params: they are jit temporaries).
    """

    def __init__(self, params, world_size: int, out_dtype=jnp.bfloat16):
        self.world_size = world_size
        # One-time re-layout at shard time (mirrors FSDP sharding whatever
        # layout the wrapped module's parameters are stored in).
        kernel_params = {
            "fc1.weight": jnp.asarray(params["fc1.weight"]).T.astype(jnp.bfloat16),
            "fc1.bias": jnp.asarray(params["fc1.bias"]).reshape(1, -1).astype(jnp.float32),
            "fc2.weight": jnp.asarray(params["fc2.weight"]).T.astype(jnp.bfloat16),
            "fc2.bias": jnp.asarray(params["fc2.bias"]).reshape(1, -1).astype(jnp.float32),
        }
        self.sharded = {}
        self.metadata = {}
        for name, p in kernel_params.items():
            shards, meta = shard_tensor(p, world_size)
            self.sharded[name] = shards
            self.metadata[name] = meta

        metadata = self.metadata  # static closure for jit

        def fwd(sharded, x):
            # gather_all_parameters(): all-gather + trim padding + reshape.
            # No transpose/cast here -- shards are already kernel-ready.
            w1_t = fsdp_all_gather(sharded["fc1.weight"], metadata["fc1.weight"])
            b1 = fsdp_all_gather(sharded["fc1.bias"], metadata["fc1.bias"])
            w2_t = fsdp_all_gather(sharded["fc2.weight"], metadata["fc2.weight"])
            b2 = fsdp_all_gather(sharded["fc2.bias"], metadata["fc2.bias"])
            return mlp_forward_pallas(x.astype(jnp.bfloat16),
                                      w1_t, b1, w2_t, b2,
                                      out_dtype=out_dtype)

        self._forward = jax.jit(fwd)

    def __call__(self, x):
        # free_params(): gathered full params are jit temporaries, released
        # when the call returns.
        return self._forward(self.sharded, x)


# ----------------------------------------------------------------------------
# Pure-JAX f32 reference for correctness check
# ----------------------------------------------------------------------------
def mlp_reference(x, w1, b1, w2, b2):
    h = jnp.maximum(x @ w1.T + b1, 0.0)
    return h @ w2.T + b2


if __name__ == "__main__":
    key = jax.random.PRNGKey(0)
    kx, k1, k2, k3, k4 = jax.random.split(key, 5)

    # Small but lane-dense MLP shapes (H, O multiples of 128; D tiled by 128).
    B, D, H, O = 256, 256, 256, 128
    WORLD_SIZE = 3  # odd world size -> padding path is exercised

    x = jax.random.normal(kx, (B, D), dtype=jnp.float32)

    params = {
        "fc1.weight": jax.random.normal(k1, (H, D), dtype=jnp.float32) / jnp.sqrt(D),
        "fc1.bias": jax.random.normal(k2, (H,), dtype=jnp.float32) * 0.1,
        "fc2.weight": jax.random.normal(k3, (O, H), dtype=jnp.float32) / jnp.sqrt(H),
        "fc2.bias": jax.random.normal(k4, (O,), dtype=jnp.float32) * 0.1,
    }

    ref = mlp_reference(
        x, params["fc1.weight"], params["fc1.bias"],
        params["fc2.weight"], params["fc2.bias"],
    )

    # Fused (weights-resident) path through the FSDP wrapper.
    model = SimpleFSDPJax(params, world_size=WORLD_SIZE)
    out = jax.block_until_ready(model(x))
    assert out.shape == (B, O)
    assert out.dtype == jnp.bfloat16
    # bf16 MXU inputs + bf16 output vs. an f32 reference.
    assert jnp.allclose(out.astype(jnp.float32), ref, atol=5e-2, rtol=5e-2), \
        "fused path mismatch vs reference"

    # Also exercise the k-tiled (large-D) fallback path directly.
    w1_t = params["fc1.weight"].T.astype(jnp.bfloat16)
    w2_t = params["fc2.weight"].T.astype(jnp.bfloat16)
    b1 = params["fc1.bias"].reshape(1, -1).astype(jnp.float32)
    b2 = params["fc2.bias"].reshape(1, -1).astype(jnp.float32)
    out2 = jax.block_until_ready(
        mlp_forward_pallas(x.astype(jnp.bfloat16), w1_t, b1, w2_t, b2,
                           tm=128, tk=128, fused=False))
    assert jnp.allclose(out2.astype(jnp.float32), ref, atol=5e-2, rtol=5e-2), \
        "k-tiled path mismatch vs reference"

    print("KERNEL_OK")
</pallas_src>

<mosaic_0001>
module attributes {stable_mosaic.version = 11 : i64} {
  func.func @_mlp_fused_kernel(%arg0: i32, %arg1: memref<128x256xbf16, #tpu.memory_space<vmem>>, %arg2: memref<256x256xbf16, #tpu.memory_space<vmem>>, %arg3: memref<1x256xf32, #tpu.memory_space<vmem>>, %arg4: memref<256x128xbf16, #tpu.memory_space<vmem>>, %arg5: memref<1x128xf32, #tpu.memory_space<vmem>>, %arg6: memref<128x128xbf16, #tpu.memory_space<vmem>>) attributes {dimension_semantics = [#tpu.dimension_semantics<parallel>], iteration_bounds = array<i64: 2>, scalar_prefetch = 0 : i64, scratch_operands = 0 : i64, tpu.core_type = #tpu.core_type<tc>, window_params = [{transform_indices = @transform_0, window_bounds = array<i64: 128, 256>}, {pipeline_mode = #tpu.pipeline_mode<synchronous>, transform_indices = @transform_1, window_bounds = array<i64: 256, 256>}, {pipeline_mode = #tpu.pipeline_mode<synchronous>, transform_indices = @transform_2, window_bounds = array<i64: 1, 256>}, {pipeline_mode = #tpu.pipeline_mode<synchronous>, transform_indices = @transform_3, window_bounds = array<i64: 256, 128>}, {pipeline_mode = #tpu.pipeline_mode<synchronous>, transform_indices = @transform_4, window_bounds = array<i64: 1, 128>}, {transform_indices = @transform_5, window_bounds = array<i64: 128, 128>}]} {
    %c0 = arith.constant 0 : index
    %c0_0 = arith.constant 0 : index
    %0 = vector.load %arg1[%c0, %c0_0] : memref<128x256xbf16, #tpu.memory_space<vmem>>, vector<128x256xbf16>
    %c0_1 = arith.constant 0 : index
    %c0_2 = arith.constant 0 : index
    %1 = vector.load %arg2[%c0_1, %c0_2] : memref<256x256xbf16, #tpu.memory_space<vmem>>, vector<256x256xbf16>
    %cst = arith.constant dense<0.000000e+00> : vector<128x256xf32>
    %2 = tpu.matmul %0, %1, %cst {dimension_numbers = #tpu.dot_dimension_numbers<[1], [0], [0], [1], [0, 0, 1, 1], [], []>} : vector<128x256xbf16>, vector<256x256xbf16>, vector<128x256xf32> -> vector<128x256xf32>
    %c0_3 = arith.constant 0 : index
    %c0_4 = arith.constant 0 : index
    %3 = vector.load %arg3[%c0_3, %c0_4] : memref<1x256xf32, #tpu.memory_space<vmem>>, vector<1x256xf32>
    %4 = vector.broadcast %3 : vector<1x256xf32> to vector<128x256xf32>
    %5 = arith.addf %2, %4 : vector<128x256xf32>
    %cst_5 = arith.constant 0.000000e+00 : f32
    %6 = vector.broadcast %cst_5 : f32 to vector<128x256xf32>
    %7 = arith.maximumf %5, %6 : vector<128x256xf32>
    %8 = arith.truncf %7 : vector<128x256xf32> to vector<128x256xbf16>
    %c0_6 = arith.constant 0 : index
    %c0_7 = arith.constant 0 : index
    %9 = vector.load %arg4[%c0_6, %c0_7] : memref<256x128xbf16, #tpu.memory_space<vmem>>, vector<256x128xbf16>
    %cst_8 = arith.constant dense<0.000000e+00> : vector<128x128xf32>
    %10 = tpu.matmul %8, %9, %cst_8 {dimension_numbers = #tpu.dot_dimension_numbers<[1], [0], [0], [1], [0, 0, 1, 1], [], []>} : vector<128x256xbf16>, vector<256x128xbf16>, vector<128x128xf32> -> vector<128x128xf32>
    %c0_9 = arith.constant 0 : index
    %c0_10 = arith.constant 0 : index
    %11 = vector.load %arg5[%c0_9, %c0_10] : memref<1x128xf32, #tpu.memory_space<vmem>>, vector<1x128xf32>
    %12 = vector.broadcast %11 : vector<1x128xf32> to vector<128x128xf32>
    %13 = arith.addf %10, %12 : vector<128x128xf32>
    %14 = arith.truncf %13 : vector<128x128xf32> to vector<128x128xbf16>
    %c0_11 = arith.constant 0 : index
    %c0_12 = arith.constant 0 : index
    %15 = vector.load %arg6[%c0_11, %c0_12] : memref<128x128xbf16, #tpu.memory_space<vmem>>, vector<128x128xbf16>
    tpu.vector_store %arg6[%c0_11, %c0_12], %14 {strides = array<i32>} : memref<128x128xbf16, #tpu.memory_space<vmem>>, vector<128x128xbf16>,
    return
  }
  func.func @transform_0(%arg0: i32) -> (i32, i32) {
    %c0_i32 = arith.constant 0 : i32
    %c0_i32_0 = arith.constant 0 : i32
    return %arg0, %c0_i32 : i32, i32
  }
  func.func @transform_1(%arg0: i32) -> (i32, i32) {
    %c0_i32 = arith.constant 0 : i32
    %c0_i32_0 = arith.constant 0 : i32
    %c0_i32_1 = arith.constant 0 : i32
    return %c0_i32, %c0_i32_0 : i32, i32
  }
  func.func @transform_2(%arg0: i32) -> (i32, i32) {
    %c0_i32 = arith.constant 0 : i32
    %c0_i32_0 = arith.constant 0 : i32
    %c0_i32_1 = arith.constant 0 : i32
    return %c0_i32, %c0_i32_0 : i32, i32
  }
  func.func @transform_3(%arg0: i32) -> (i32, i32) {
    %c0_i32 = arith.constant 0 : i32
    %c0_i32_0 = arith.constant 0 : i32
    %c0_i32_1 = arith.constant 0 : i32
    return %c0_i32, %c0_i32_0 : i32, i32
  }
  func.func @transform_4(%arg0: i32) -> (i32, i32) {
    %c0_i32 = arith.constant 0 : i32
    %c0_i32_0 = arith.constant 0 : i32
    %c0_i32_1 = arith.constant 0 : i32
    return %c0_i32, %c0_i32_0 : i32, i32
  }
  func.func @transform_5(%arg0: i32) -> (i32, i32) {
    %c0_i32 = arith.constant 0 : i32
    %c0_i32_0 = arith.constant 0 : i32
    return %arg0, %c0_i32 : i32, i32
  }
}

</mosaic_0001>

<bundles_post_ra>
// kernel: fwd.1
= control target key start
LH: loop header
LB: loop body
LE: loop exit
PB: predicated region body
PF: predicated region fallthrough
CT: control target
= control target key end

     0   :  { %10 = vsyncpa [#allocation3], 0  ;;  %s1864_s0 = inlined_call_operand.vmem [shape: bf16[256,256], index: 0, kind: input, shape index: {}]   ;;  %s1865_s1 = inlined_call_operand.vmem [shape: bf16[256,256], index: 1, kind: input, shape index: {}]   ;;  %s1866_s2 = inlined_call_operand.vmem [shape: f32[1,256], index: 2, kind: input, shape index: {}]   ;;  %s1867_s3 = inlined_call_operand.vmem [shape: bf16[256,128], index: 3, kind: input, shape index: {}]   ;;  %s1868_s4 = inlined_call_operand.vmem [shape: f32[1,128], index: 4, kind: input, shape index: {}]   ;;  %s1869_s5 = inlined_call_operand.hbm [shape: bf16[256,128], index: 5, kind: output, shape index: {}]  }
   0x1   :  { %12 = vsyncpa [#allocation3 + $0x1], 0  ;;  %s1526_s18 = smov 0   ;;  %s1528_s19 = smov 0  }
   0x2   :  { %s1530_s20 = smov 0   ;;  %s1532_s21 = smov 0  }
   0x3 LB: > { %s1547_s22 = sadd.s32 4294967295, %s1491_s21   ;;  %s1079_s23 = sadd.s32 4294967294, %s1491_s21   ;;  %s1491_s21 = sphi %s1532_s21, %s1875_s21   ;;  %s1487_s20 = sphi %s1530_s20, %s1874_s20   ;;  %s1483_s19 = sphi %s1528_s19, %s1873_s19   ;;  %s1479_s18 = sphi %s1526_s18, %s1872_s18  }
   0x4   : > { %s1551_s24 = sadd.s32 1, %s1491_s21   ;;  %s135_s25 = sadd.s32 1, %s1487_s20 }
   0x5   : > { %s132_s26 = ssub.s32 %s1491_s21, %s1551_s24  ;;  %p145_p0 = scmp.ne.s32.totalorder %s1487_s20, %s1483_s19 }
   0x6   : > { %p133_p1 = scmp.eq.s32.totalorder %s132_s26, 0  ;;  %p146_p2 = scmp.eq.s32.totalorder %s1547_s22, 1 }
   0x7   : > { %p151_p3 = scmp.ne.s32.totalorder %s1483_s19, %s1479_s18  ;;  %p152_p4 = scmp.eq.s32.totalorder %s1079_s23, 1 }
   0x8   : > { %s1562_s27 = scalar_select %p133_p1, %s1487_s20, %s135_s25  }
   0x9   : > { %p1564_p5 = por %p146_p2, %p145_p0  ;;  %p1568_p6 = por %p152_p4, %p151_p3 }
   0xa   : > { %p1082_p7 = scmp.ge.s32.totalorder %s1491_s21, 1  ;;  %p192_p8 = scmp.lt.s32.totalorder %s1491_s21, 3 }
   0xc   : > { %p193_p9 = pnand %p1082_p7, %p192_p8 }
   0xd   : > { %s1084_s15 = sshll.u32 (!%p193_p9), %s1547_s22, 4  ;;  %s218_s16 = sand.u32 (!%p193_p9), 1, %s1483_s19  }
   0xe   : > { %196 = sbr.rel (%p193_p9) target bundleno = 565 (0x235), region = 40  ;;  %p222_p10 = scmp.lt.s32.totalorder (!%p193_p9), %s1084_s15, 31 }
   0xf   : > { %s1083_s26 = sshll.u32 (!%p193_p9), %s218_s16, 6  ;;  %s1493_s10 = smov (!%p193_p9), [#allocation2]  }
  0x10   : > { %s1789_s30 = scalar_lea.vmem (!%p193_p9), [#allocation2], %s1083_s26  ;;  %s1435_s11 = sshll.u32 (!%p193_p9), %s1493_s10, 4  ;;  %s1436_s11 = int_to_ptr.vmem [resolvable:$false] %s1435_s11 }
  0x11   : > { %s1017_s6 = sshll.u32 (!%p193_p9), %s1789_s30, 4  ;;  %s1819_s6 = int_to_ptr.vmem [resolvable:$true] %s1017_s6 }
  0x12   : > { %p1438_p0 = scmp.lt.s32.totalorder (!%p193_p9), %s1819_s6, %s1436_s11 }
  0x13   : > { %v1343_v0 = vld [vmem:[%s1865_s1 + $0x74] ss:$8 sps:$4 sm:$0xff]   ;;  %v1345_v1 = vld [vmem:[%s1865_s1 + $0x70] ss:$8 sps:$4 sm:$0xff]   ;;  %v1346_v2 = vld [vmem:[%s1865_s1 + $0x64] ss:$8 sps:$4 sm:$0xff]  }
  0x14   : > { %530 = vmatprep.subr.bf16.mxu0 %v1343_v0  ;;  %v1348_v3 = vld [vmem:[%s1865_s1 + $0x60] ss:$8 sps:$4 sm:$0xff]   ;;  %v1349_v4 = vld [vmem:[%s1865_s1 + $0x54] ss:$8 sps:$4 sm:$0xff]   ;;  %v1351_v5 = vld [vmem:[%s1865_s1 + $0x50] ss:$8 sps:$4 sm:$0xff]   ;;  %v280_v0 = vlaneseq }
  0x15   : > { %531 = vmatpush1.bf16.msra.mxu0 %v1345_v1  ;;  %v1352_v6 = vld [vmem:[%s1865_s1 + $0x44] ss:$8 sps:$4 sm:$0xff]   ;;  %v1354_v7 = vld [vmem:[%s1865_s1 + $0x40] ss:$8 sps:$4 sm:$0xff]   ;;  %v1355_v8 = vld [vmem:[%s1865_s1 + $0x34] ss:$8 sps:$4 sm:$0xff]  }
  0x16   : > { %532 = vmatprep.subr.bf16.mxu0 %v1346_v2  ;;  %s1877_s15 = smov (!%p222_p10, %s1084_s15), 31  ;;  %v1357_v9 = vld [vmem:[%s1865_s1 + $0x30] ss:$8 sps:$4 sm:$0xff]   ;;  %v1358_v10 = vld [vmem:[%s1865_s1 + $0x24] ss:$8 sps:$4 sm:$0xff]   ;;  %v281_v1 = vshrl.u32 %v280_v0, 7 }
  0x17   : > { %s1173_s12 = sshll.u32 %s1877_s15, 3  ;;  %v1360_v11 = vld [vmem:[%s1865_s1 + $0x20] ss:$8 sps:$4 sm:$0xff]   ;;  %v1361_v12 = vld [vmem:[%s1865_s1 + $0x14] ss:$8 sps:$4 sm:$0xff]   ;;  %s1190_s15 = sshll.u32 %s1547_s22, 10 }
  0x18   : > { %s1614_s23 = scalar_lea.vmem %s1864_s0, %s1173_s12  ;;  %v1363_v14 = vld [vmem:[%s1865_s1 + $0x10] ss:$8 sps:$4 sm:$0xff]   ;;  %v1364_v15 = vld [vmem:[%s1865_s1 + $0x4] ss:$8 sps:$4 sm:$0xff]   ;;  %v1366_v16 = vld [vmem:[%s1865_s1] ss:$8 sps:$4 sm:$0xff]   ;;  %s1817_s9 = scalar_lea.hbm %s1869_s5, %s1190_s15 }
  0x19   : > { %533 = vmatpush1.bf16.msra.mxu0 %v1348_v3  ;;  %v1393_v13 = vld [vmem:[%s1614_s23 + $0x4] ss:$8 sps:$4 sm:$0xff]   ;;  %v1367_v17 = vld [vmem:[%s1865_s1 + $0xf4] ss:$8 sps:$4 sm:$0xff]   ;;  %v1369_v18 = vld [vmem:[%s1865_s1 + $0xf0] ss:$8 sps:$4 sm:$0xff]  }
  0x1a   : > { %534 = vmatprep.subr.bf16.mxu0 %v1349_v4  ;;  %562 = vmatprep.mubr.bf16.mxu0 %v1393_v13  ;;  %v1370_v19 = vld [vmem:[%s1865_s1 + $0xe4] ss:$8 sps:$4 sm:$0xff]   ;;  %v1415_v20 = vld [vmem:[%s1867_s3 + $0x78] sm:$0xff]   ;;  %v1372_v21 = vld [vmem:[%s1865_s1 + $0xe0] ss:$8 sps:$4 sm:$0xff]   ;;  %v286_v2 = vsub.s32 1, %v281_v1 }
  0x1b   : > { %v1416_v22 = vld [vmem:[%s1867_s3 + $0x38] sm:$0xff]   ;;  %1238 = vmatprep.subr.bf16.mxu1 %v1415_v20  ;;  %v1417_v24 = vld [vmem:[%s1867_s3 + $0x70] sm:$0xff]   ;;  %v1419_v26 = vld [vmem:[%s1867_s3 + $0x68] sm:$0xff]   ;;  %v282_v3 = vsub.s32 0, %v281_v1  ;;  %s1431_s22 = scalar_lea.vmem %s1819_s6, 1024  ;;  %s1437_s12 = scalar_lea.vmem %s1436_s11, 2048 }
  0x1c   : > { %v1373_v23 = vld [vmem:[%s1865_s1 + $0xd4] ss:$8 sps:$4 sm:$0xff]   ;;  %1239 = vmatpush3.bf16.msra.mxu1 %v1416_v22  ;;  %v1375_v27 = vld [vmem:[%s1865_s1 + $0xd0] ss:$8 sps:$4 sm:$0xff]   ;;  %v1376_v28 = vld [vmem:[%s1865_s1 + $0xc4] ss:$8 sps:$4 sm:$0xff]   ;;  %p1432_p11 = scmp.ne.s32.totalorder %s1819_s6, %s1431_s22  ;;  %p1439_p1 = scmp.lt.s32.totalorder %s1437_s12, %s1431_s22 }
  0x1d   : > { %535 = vmatpush1.bf16.msra.mxu0 %v1351_v5  ;;  %v1418_v25 = vld [vmem:[%s1867_s3 + $0x30] sm:$0xff]   ;;  %1240 = vmatprep.subr.bf16.mxu1 %v1417_v24  ;;  %v1420_v29 = vld [vmem:[%s1867_s3 + $0x28] sm:$0xff]   ;;  %v1421_v30 = vld [vmem:[%s1867_s3 + $0x60] sm:$0xff]  }
  0x1e   : > { %536 = vmatprep.subr.bf16.mxu0 %v1352_v6  ;;  %v1378_v31 = vld [vmem:[%s1865_s1 + $0xc0] ss:$8 sps:$4 sm:$0xff]   ;;  %v1379_v33 = vld [vmem:[%s1865_s1 + $0xb4] ss:$8 sps:$4 sm:$0xff]   ;;  %v1381_v35 = vld [vmem:[%s1865_s1 + $0xb0] ss:$8 sps:$4 sm:$0xff]   ;;  %p1433_p12 = pnand %p1432_p11, %p1564_p5  ;;  %p1440_p2 = por %p1439_p1, %p1438_p0 }
  0x1f   : > { %v1422_v32 = vld [vmem:[%s1867_s3 + $0x20] sm:$0xff]   ;;  %v1423_v34 = vld [vmem:[%s1867_s3 + $0x58] sm:$0xff]   ;;  %v1425_v58 = vld [vmem:[%s1867_s3 + $0x50] sm:$0xff]  }
  0x20   : > { %1241 = vmatpush3.bf16.msra.mxu1 %v1418_v25  ;;  %v1424_v36 = vld [vmem:[%s1867_s3 + $0x18] sm:$0xff]   ;;  %v1382_v37 = vld [vmem:[%s1865_s1 + $0xa4] ss:$8 sps:$4 sm:$0xff]   ;;  %v1384_v38 = vld [vmem:[%s1865_s1 + $0xa0] ss:$8 sps:$4 sm:$0xff]   ;;  %p1434_p13 = pneg %p1433_p12 }
  0x21   : > { %537 = vmatpush1.bf16.msra.mxu0 %v1354_v7  ;;  %1242 = vmatprep.subr.bf16.mxu1 %v1419_v26  ;;  %v1385_v39 = vld [vmem:[%s1865_s1 + $0x94] ss:$8 sps:$4 sm:$0xff]   ;;  %v1387_v40 = vld [vmem:[%s1865_s1 + $0x90] ss:$8 sps:$4 sm:$0xff]   ;;  %v1388_v41 = vld [vmem:[%s1865_s1 + $0x84] ss:$8 sps:$4 sm:$0xff]  }
  0x22   : > { %538 = vmatprep.subr.bf16.mxu0 %v1355_v8  ;;  %v1390_v42 = vld [vmem:[%s1865_s1 + $0x80] ss:$8 sps:$4 sm:$0xff]   ;;  %v1394_v44 = vld [vmem:[%s1614_s23 + $0x14] ss:$8 sps:$4 sm:$0xff]   ;;  %v1396_v45 = vld [vmem:[%s1614_s23 + $0x10] ss:$8 sps:$4 sm:$0xff]   ;;  %p1441_p3 = pnand %p1440_p2, %p1434_p13 }
  0x23   : > { %v1391_v43 = vld [vmem:[%s1614_s23] ss:$8 sps:$4 sm:$0xff]   ;;  %v1397_v46 = vld [vmem:[%s1614_s23 + $0x24] ss:$8 sps:$4 sm:$0xff]   ;;  %v1400_v48 = vld [vmem:[%s1614_s23 + $0x34] ss:$8 sps:$4 sm:$0xff]  }
  0x24   : > { %1243 = vmatpush3.bf16.msra.mxu1 %v1420_v29  ;;  %v1399_v47 = vld [vmem:[%s1614_s23 + $0x20] ss:$8 sps:$4 sm:$0xff]   ;;  %v1402_v49 = vld [vmem:[%s1614_s23 + $0x30] ss:$8 sps:$4 sm:$0xff]   ;;  %v1403_v50 = vld [vmem:[%s1614_s23 + $0x44] ss:$8 sps:$4 sm:$0xff]  }
  0x25   : > { %539 = vmatpush1.bf16.msra.mxu0 %v1357_v9  ;;  %1244 = vmatprep.subr.bf16.mxu1 %v1421_v30  ;;  %v1405_v51 = vld [vmem:[%s1614_s23 + $0x40] ss:$8 sps:$4 sm:$0xff]   ;;  %v1406_v52 = vld [vmem:[%s1614_s23 + $0x54] ss:$8 sps:$4 sm:$0xff]   ;;  %v1408_v53 = vld [vmem:[%s1614_s23 + $0x50] ss:$8 sps:$4 sm:$0xff]  }
  0x26   : > { %540 = vmatprep.subr.bf16.mxu0 %v1358_v10  ;;  %v1409_v54 = vld [vmem:[%s1614_s23 + $0x64] ss:$8 sps:$4 sm:$0xff]   ;;  %v1411_v55 = vld [vmem:[%s1614_s23 + $0x60] ss:$8 sps:$4 sm:$0xff]   ;;  %v1412_v56 = vld [vmem:[%s1614_s23 + $0x74] ss:$8 sps:$4 sm:$0xff]  }
  0x27   : > { %v1414_v57 = vld [vmem:[%s1614_s23 + $0x70] ss:$8 sps:$4 sm:$0xff]   ;;  %v1427_v60 = vld [vmem:[%s1867_s3 + $0x48] sm:$0xff]   ;;  %v1429_v62 = vld [vmem:[%s1867_s3 + $0x40] sm:$0xff]   ;;  %s1824_s23 = scalar_lea.sflag [#allocation3], %s218_s16 }
  0x28   : > { %1245 = vmatpush3.bf16.msra.mxu1 %v1422_v32  ;;  %v1426_v59 = vld [vmem:[%s1867_s3 + $0x10] sm:$0xff]   ;;  %v1428_v61 = vld [vmem:[%s1867_s3 + $0x8] sm:$0xff]   ;;  %v1430_v63 = vld [vmem:[%s1867_s3] sm:$0xff]  }
  0x29   : > { %541 = vmatpush1.bf16.msra.mxu0 %v1360_v11  ;;  %1246 = vmatprep.subr.bf16.mxu1 %v1423_v34  ;;  %v278_v4 = vld [vmem:[%s1866_s2] sm:$0x3] }
  0x2a   : > { %542 = vmatprep.subr.bf16.mxu0 %v1361_v12  ;;  %v1743_v6 = vrot.slane %v278_v4, %v286_v2  ;;  %v1745_v7 = vrot.slane %v278_v4, %v282_v3 }
  0x2c   : > { %1247 = vmatpush3.bf16.msra.mxu1 %v1424_v36 }
  0x2d   : > { %543 = vmatpush1.bf16.msra.mxu0 %v1363_v14  ;;  %1248 = vmatprep.subr.bf16.mxu1 %v1425_v58 }
  0x2e   : > { %544 = vmatprep.subr.bf16.mxu0 %v1364_v15 }
  0x30   : > { %1249 = vmatpush3.bf16.msra.mxu1 %v1426_v59 }
  0x31   : > { %545 = vmatpush1.bf16.msra.mxu0 %v1366_v16  ;;  %1250 = vmatprep.subr.bf16.mxu1 %v1427_v60 }
  0x32   : > { %546 = vmatprep.subr.bf16.mxu0 %v1367_v17 }
  0x34   : > { %1251 = vmatpush3.bf16.msra.mxu1 %v1428_v61 }
  0x35   : > { %547 = vmatpush2.bf16.msra.mxu0 %v1369_v18  ;;  %1252 = vmatprep.subr.bf16.mxu1 %v1429_v62 }
  0x36   : > { %548 = vmatprep.subr.bf16.mxu0 %v1370_v19 }
  0x38   : > { %1253 = vmatpush3.bf16.msra.mxu1 %v1430_v63 }
  0x39   : > { %549 = vmatpush2.bf16.msra.mxu0 %v1372_v21 }
  0x3a   : > { %550 = vmatprep.subr.bf16.mxu0 %v1373_v23 }
  0x3d   : > { %551 = vmatpush2.bf16.msra.mxu0 %v1375_v27 }
  0x3e   : > { %552 = vmatprep.subr.bf16.mxu0 %v1376_v28 }
  0x41   : > { %553 = vmatpush2.bf16.msra.mxu0 %v1378_v31 }
  0x42   : > { %554 = vmatprep.subr.bf16.mxu0 %v1379_v33 }
  0x45   : > { %555 = vmatpush2.bf16.msra.mxu0 %v1381_v35 }
  0x46   : > { %556 = vmatprep.subr.bf16.mxu0 %v1382_v37 }
  0x49   : > { %557 = vmatpush2.bf16.msra.mxu0 %v1384_v38 }
  0x4a   : > { %558 = vmatprep.subr.bf16.mxu0 %v1385_v39 }
  0x4d   : > { %559 = vmatpush2.bf16.msra.mxu0 %v1387_v40 }
  0x4e   : > { %560 = vmatprep.subr.bf16.mxu0 %v1388_v41 }
  0x51   : > { %561 = vmatpush2.bf16.msra.mxu0 %v1390_v42 }
  0x54   : > { %563 = vmatmul.mubr.bf16.vlgmr.msra.gmra.mxu0 %v1391_v43 }
  0x55   : > { %572 = vmatprep.mubr.bf16.mxu0 %v1394_v44 }
  0x5c   : > { %573 = vmatmul.mubr.bf16.gmra.mxu0 %v1396_v45 }
  0x5d   : > { %582 = vmatprep.mubr.bf16.mxu0 %v1397_v46 }
  0x64   : > { %583 = vmatmul.mubr.bf16.gmra.mxu0 %v1399_v47 }
  0x65   : > { %592 = vmatprep.mubr.bf16.mxu0 %v1400_v48 }
  0x6c   : > { %593 = vmatmul.mubr.bf16.gmra.mxu0 %v1402_v49 }
  0x6d   : > { %602 = vmatprep.mubr.bf16.mxu0 %v1403_v50 }
  0x74   : > { %603 = vmatmul.mubr.bf16.gmra.mxu0 %v1405_v51 }
  0x75   : > { %612 = vmatprep.mubr.bf16.mxu0 %v1406_v52 }
  0x7c   : > { %613 = vmatmul.mubr.bf16.gmra.mxu0 %v1408_v53 }
  0x7d   : > { %622 = vmatprep.mubr.bf16.mxu0 %v1409_v54 }
  0x84   : > { %623 = vmatmul.mubr.bf16.gmra.mxu0 %v1411_v55 }
  0x85   : > { %632 = vmatprep.mubr.bf16.mxu0 %v1412_v56 }
  0x8c   : > { %633 = vmatmul.mubr.bf16.gmra.mxu0 %v1414_v57 }
 0x114   : > { %v564_v5 = vpop.f32.mrf.mxu0 }
 0x115   : > { %v565_v12 = vadd.f32 %v564_v5, %v1745_v7 }
 0x116   : > { %v566_v8 = vpop.f32.mrf.mxu0 }
 0x117   : > { %v567_v10 = vadd.f32 %v566_v8, %v1743_v6  ;;  %v643_v19 = vmax.f32 %v565_v12, 0.0 }
 0x118   : > { %v568_v9 = vpop.f32.mrf.mxu0 }
 0x119   : > { %v569_v11 = vadd.f32 %v568_v9, %v1745_v7  ;;  %v644_v17 = vmax.f32 %v567_v10, 0.0 }
 0x11a   : > { %v570_v13 = vpop.f32.mrf.mxu0 }
 0x11b   : > { %v571_v14 = vadd.f32 %v570_v13, %v1743_v6  ;;  %v645_v15 = vmax.f32 %v569_v11, 0.0 }
 0x11c   : > { %v574_v16 = vpop.f32.mrf.mxu0 }
 0x11d   : > { %v646_v18 = vmax.f32 %v571_v14, 0.0  ;;  %v675_v22 = vpack.c.bf16 %v645_v15, %v643_v19  ;;  %v575_v26 = vadd.f32 %v574_v16, %v1745_v7 }
 0x11e   : > { %v576_v20 = vpop.f32.mrf.mxu0 }
 0x11f   : > { %v676_v21 = vpack.c.bf16 %v646_v18, %v644_v17  ;;  %v577_v24 = vadd.f32 %v576_v20, %v1743_v6  ;;  %v647_v33 = vmax.f32 %v575_v26, 0.0 }
 0x120   : > { %v578_v23 = vpop.f32.mrf.mxu0 }
 0x121   : > { %v579_v25 = vadd.f32 %v578_v23, %v1745_v7  ;;  %858 = vmatprep.mubr.bf16.mxu1 %v676_v21  ;;  %v648_v31 = vmax.f32 %v577_v24, 0.0 }
 0x122   : > { %v580_v27 = vpop.f32.mrf.mxu0  ;;  %859 = vmatmul.mubr.bf16.vlgmr.msra.gmra.mxu1 %v675_v22 }
 0x123   : > { %v581_v28 = vadd.f32 %v580_v27, %v1743_v6  ;;  %v649_v29 = vmax.f32 %v579_v25, 0.0 }
 0x124   : > { %v584_v30 = vpop.f32.mrf.mxu0 }
 0x125   : > { %v650_v32 = vmax.f32 %v581_v28, 0.0  ;;  %v677_v36 = vpack.c.bf16 %v649_v29, %v647_v33  ;;  %v585_v40 = vadd.f32 %v584_v30, %v1745_v7 }
 0x126   : > { %v586_v34 = vpop.f32.mrf.mxu0 }
 0x127   : > { %v678_v35 = vpack.c.bf16 %v650_v32, %v648_v31  ;;  %v587_v38 = vadd.f32 %v586_v34, %v1743_v6  ;;  %v651_v47 = vmax.f32 %v585_v40, 0.0 }
 0x128   : > { %v588_v37 = vpop.f32.mrf.mxu0 }
 0x129   : > { %v589_v39 = vadd.f32 %v588_v37, %v1745_v7  ;;  %866 = vmatprep.mubr.bf16.mxu1 %v678_v35  ;;  %v652_v45 = vmax.f32 %v587_v38, 0.0 }
 0x12a   : > { %v590_v41 = vpop.f32.mrf.mxu0  ;;  %867 = vmatmul.mubr.bf16.gmra.mxu1 %v677_v36 }
 0x12b   : > { %v591_v42 = vadd.f32 %v590_v41, %v1743_v6  ;;  %v653_v43 = vmax.f32 %v589_v39, 0.0 }
 0x12c   : > { %v594_v44 = vpop.f32.mrf.mxu0 }
 0x12d   : > { %v654_v46 = vmax.f32 %v591_v42, 0.0  ;;  %v679_v50 = vpack.c.bf16 %v653_v43, %v651_v47  ;;  %v595_v54 = vadd.f32 %v594_v44, %v1745_v7 }
 0x12e   : > { %v596_v48 = vpop.f32.mrf.mxu0 }
 0x12f   : > { %v680_v49 = vpack.c.bf16 %v654_v46, %v652_v45  ;;  %v597_v52 = vadd.f32 %v596_v48, %v1743_v6  ;;  %v655_v61 = vmax.f32 %v595_v54, 0.0 }
 0x130   : > { %v598_v51 = vpop.f32.mrf.mxu0 }
 0x131   : > { %v599_v53 = vadd.f32 %v598_v51, %v1745_v7  ;;  %874 = vmatprep.mubr.bf16.mxu1 %v680_v49  ;;  %v656_v59 = vmax.f32 %v597_v52, 0.0 }
 0x132   : > { %v600_v55 = vpop.f32.mrf.mxu0  ;;  %875 = vmatmul.mubr.bf16.gmra.mxu1 %v679_v50 }
 0x133   : > { %v601_v56 = vadd.f32 %v600_v55, %v1743_v6  ;;  %v657_v57 = vmax.f32 %v599_v53, 0.0 }
 0x134   : > { %v604_v58 = vpop.f32.mrf.mxu0 }
 0x135   : > { %v658_v60 = vmax.f32 %v601_v56, 0.0  ;;  %v681_v0 = vpack.c.bf16 %v657_v57, %v655_v61  ;;  %v605_v4 = vadd.f32 %v604_v58, %v1745_v7 }
 0x136   : > { %v606_v62 = vpop.f32.mrf.mxu0 }
 0x137   : > { %v682_v63 = vpack.c.bf16 %v658_v60, %v656_v59  ;;  %v607_v2 = vadd.f32 %v606_v62, %v1743_v6  ;;  %v659_v13 = vmax.f32 %v605_v4, 0.0 }
 0x138   : > { %v608_v1 = vpop.f32.mrf.mxu0 }
 0x139   : > { %v609_v3 = vadd.f32 %v608_v1, %v1745_v7  ;;  %882 = vmatprep.mubr.bf16.mxu1 %v682_v63  ;;  %v660_v11 = vmax.f32 %v607_v2, 0.0 }
 0x13a   : > { %v610_v5 = vpop.f32.mrf.mxu0  ;;  %883 = vmatmul.mubr.bf16.gmra.mxu1 %v681_v0 }
 0x13b   : > { %v611_v8 = vadd.f32 %v610_v5, %v1743_v6  ;;  %v661_v9 = vmax.f32 %v609_v3, 0.0 }
 0x13c   : > { %v614_v10 = vpop.f32.mrf.mxu0 }
 0x13d   : > { %v662_v12 = vmax.f32 %v611_v8, 0.0  ;;  %v683_v16 = vpack.c.bf16 %v661_v9, %v659_v13  ;;  %v615_v20 = vadd.f32 %v614_v10, %v1745_v7 }
 0x13e   : > { %v616_v14 = vpop.f32.mrf.mxu0 }
 0x13f   : > { %v684_v15 = vpack.c.bf16 %v662_v12, %v660_v11  ;;  %v617_v18 = vadd.f32 %v616_v14, %v1743_v6  ;;  %v663_v27 = vmax.f32 %v615_v20, 0.0 }
 0x140   : > { %v618_v17 = vpop.f32.mrf.mxu0 }
 0x141   : > { %v619_v19 = vadd.f32 %v618_v17, %v1745_v7  ;;  %890 = vmatprep.mubr.bf16.mxu1 %v684_v15  ;;  %v664_v25 = vmax.f32 %v617_v18, 0.0 }
 0x142   : > { %v620_v21 = vpop.f32.mrf.mxu0  ;;  %891 = vmatmul.mubr.bf16.gmra.mxu1 %v683_v16 }
 0x143   : > { %v621_v22 = vadd.f32 %v620_v21, %v1743_v6  ;;  %v665_v23 = vmax.f32 %v619_v19, 0.0 }
 0x144   : > { %v624_v24 = vpop.f32.mrf.mxu0 }
 0x145   : > { %v666_v26 = vmax.f32 %v621_v22, 0.0  ;;  %v685_v30 = vpack.c.bf16 %v665_v23, %v663_v27  ;;  %v625_v34 = vadd.f32 %v624_v24, %v1745_v7 }
 0x146   : > { %v626_v28 = vpop.f32.mrf.mxu0 }
 0x147   : > { %v686_v29 = vpack.c.bf16 %v666_v26, %v664_v25  ;;  %v627_v32 = vadd.f32 %v626_v28, %v1743_v6  ;;  %v667_v41 = vmax.f32 %v625_v34, 0.0 }
 0x148   : > { %v628_v31 = vpop.f32.mrf.mxu0 }
 0x149   : > { %v629_v33 = vadd.f32 %v628_v31, %v1745_v7  ;;  %898 = vmatprep.mubr.bf16.mxu1 %v686_v29  ;;  %v668_v39 = vmax.f32 %v627_v32, 0.0 }
 0x14a   : > { %v630_v35 = vpop.f32.mrf.mxu0  ;;  %899 = vmatmul.mubr.bf16.gmra.mxu1 %v685_v30 }
 0x14b   : > { %v631_v36 = vadd.f32 %v630_v35, %v1743_v6  ;;  %v669_v37 = vmax.f32 %v629_v33, 0.0 }
 0x14c   : > { %v634_v38 = vpop.f32.mrf.mxu0 }
 0x14d   : > { %v670_v40 = vmax.f32 %v631_v36, 0.0  ;;  %v687_v44 = vpack.c.bf16 %v669_v37, %v667_v41  ;;  %v635_v48 = vadd.f32 %v634_v38, %v1745_v7 }
 0x14e   : > { %v636_v42 = vpop.f32.mrf.mxu0 }
 0x14f   : > { %v688_v43 = vpack.c.bf16 %v670_v40, %v668_v39  ;;  %v637_v46 = vadd.f32 %v636_v42, %v1743_v6  ;;  %v671_v54 = vmax.f32 %v635_v48, 0.0 }
 0x150   : > { %v638_v45 = vpop.f32.mrf.mxu0 }
 0x151   : > { %v639_v47 = vadd.f32 %v638_v45, %v1745_v7  ;;  %906 = vmatprep.mubr.bf16.mxu1 %v688_v43  ;;  %v672_v52 = vmax.f32 %v637_v46, 0.0  ;;  %v1783_v7 = vld [vmem:[%s1868_s4] ss:$0 sm:$0xff] }
 0x152   : > { %v640_v49 = vpop.f32.mrf.mxu0  ;;  %907 = vmatmul.mubr.bf16.gmra.mxu1 %v687_v44 }
 0x153   : > { %v641_v50 = vadd.f32 %v640_v49, %v1743_v6  ;;  %v673_v51 = vmax.f32 %v639_v47, 0.0 }
 0x155   : > { %v674_v53 = vmax.f32 %v641_v50, 0.0  ;;  %v689_v56 = vpack.c.bf16 %v673_v51, %v671_v54 }
 0x157   : > { %v690_v55 = vpack.c.bf16 %v674_v53, %v672_v52 }
 0x159   : > { %914 = vmatprep.mubr.bf16.mxu1 %v690_v55 }
 0x15a   : > { %915 = vmatmul.mubr.bf16.gmra.mxu1 %v689_v56 }
 0x1e2   : > { %v1254_v57 = vpop.f32.mrf.mxu1 }
 0x1e4   : > { %v1255_v58 = vpop.f32.mrf.mxu1 }
 0x1e5   : > { %v1256_v60 = vadd.f32 %v1255_v58, %v1254_v57 }
 0x1e6   : > { %v1257_v59 = vpop.f32.mrf.mxu1 }
 0x1e7   : > { %v861_v63 = vadd.f32 %v1256_v60, %v1783_v7 }
 0x1e8   : > { %v1258_v6 = vpop.f32.mrf.mxu1 }
 0x1e9   : > { %v1259_v61 = vadd.f32 %v1258_v6, %v1257_v59 }
 0x1ea   : > { %v1260_v62 = vpop.f32.mrf.mxu1 }
 0x1eb   : > { %v864_v0 = vadd.f32 %v1259_v61, %v1783_v7 }
 0x1ec   : > { %v1261_v1 = vpop.f32.mrf.mxu1 }
 0x1ed   : > { %v1194_v2 = vpack.c.bf16 %v864_v0, %v861_v63  ;;  %v1262_v4 = vadd.f32 %v1261_v1, %v1260_v62 }
 0x1ee   : > { %v1263_v3 = vpop.f32.mrf.mxu1 }
 0x1ef   : > { %1195 = vst [vmem:[%s1789_s30] sm:$0xff] %v1194_v2   ;;  %v869_v10 = vadd.f32 %v1262_v4, %v1783_v7 }
 0x1f0   : > { %v1264_v5 = vpop.f32.mrf.mxu1 }
 0x1f1   : > { %v1265_v8 = vadd.f32 %v1264_v5, %v1263_v3 }
 0x1f2   : > { %v1266_v9 = vpop.f32.mrf.mxu1 }
 0x1f3   : > { %v872_v11 = vadd.f32 %v1265_v8, %v1783_v7 }
 0x1f4   : > { %v1267_v12 = vpop.f32.mrf.mxu1 }
 0x1f5   : > { %v1199_v13 = vpack.c.bf16 %v872_v11, %v869_v10  ;;  %v1268_v15 = vadd.f32 %v1267_v12, %v1266_v9 }
 0x1f6   : > { %v1269_v14 = vpop.f32.mrf.mxu1 }
 0x1f7   : > { %1231 = vst [vmem:[%s1789_s30 + $0x8] sm:$0xff] %v1199_v13   ;;  %v877_v19 = vadd.f32 %v1268_v15, %v1783_v7 }
 0x1f8   : > { %v1270_v16 = vpop.f32.mrf.mxu1 }
 0x1f9   : > { %v1271_v17 = vadd.f32 %v1270_v16, %v1269_v14 }
 0x1fa   : > { %v1272_v18 = vpop.f32.mrf.mxu1 }
 0x1fb   : > { %v880_v20 = vadd.f32 %v1271_v17, %v1783_v7 }
 0x1fc   : > { %v1273_v21 = vpop.f32.mrf.mxu1 }
 0x1fd   : > { %v1204_v22 = vpack.c.bf16 %v880_v20, %v877_v19  ;;  %v1274_v24 = vadd.f32 %v1273_v21, %v1272_v18 }
 0x1fe   : > { %v1275_v23 = vpop.f32.mrf.mxu1 }
 0x1ff   : > { %1232 = vst [vmem:[%s1789_s30 + $0x10] sm:$0xff] %v1204_v22   ;;  %v885_v28 = vadd.f32 %v1274_v24, %v1783_v7 }
 0x200   : > { %v1276_v25 = vpop.f32.mrf.mxu1 }
 0x201   : > { %v1277_v26 = vadd.f32 %v1276_v25, %v1275_v23 }
 0x202   : > { %v1278_v27 = vpop.f32.mrf.mxu1 }
 0x203   : > { %v888_v29 = vadd.f32 %v1277_v26, %v1783_v7 }
 0x204   : > { %v1279_v30 = vpop.f32.mrf.mxu1 }
 0x205   : > { %v1209_v31 = vpack.c.bf16 %v888_v29, %v885_v28  ;;  %v1280_v33 = vadd.f32 %v1279_v30, %v1278_v27 }
 0x206   : > { %v1281_v32 = vpop.f32.mrf.mxu1 }
 0x207   : > { %1233 = vst [vmem:[%s1789_s30 + $0x18] sm:$0xff] %v1209_v31   ;;  %v893_v37 = vadd.f32 %v1280_v33, %v1783_v7 }
 0x208   : > { %v1282_v34 = vpop.f32.mrf.mxu1 }
 0x209   : > { %v1283_v35 = vadd.f32 %v1282_v34, %v1281_v32 }
 0x20a   : > { %v1284_v36 = vpop.f32.mrf.mxu1 }
 0x20b   : > { %v896_v38 = vadd.f32 %v1283_v35, %v1783_v7 }
 0x20c   : > { %v1285_v39 = vpop.f32.mrf.mxu1 }
 0x20d   : > { %v1214_v40 = vpack.c.bf16 %v896_v38, %v893_v37  ;;  %v1286_v42 = vadd.f32 %v1285_v39, %v1284_v36 }
 0x20e   : > { %v1287_v41 = vpop.f32.mrf.mxu1 }
 0x20f   : > { %1234 = vst [vmem:[%s1789_s30 + $0x20] sm:$0xff] %v1214_v40   ;;  %v901_v46 = vadd.f32 %v1286_v42, %v1783_v7 }
 0x210   : > { %v1288_v43 = vpop.f32.mrf.mxu1 }
 0x211   : > { %v1289_v44 = vadd.f32 %v1288_v43, %v1287_v41 }
 0x212   : > { %v1290_v45 = vpop.f32.mrf.mxu1 }
 0x213   : > { %v904_v47 = vadd.f32 %v1289_v44, %v1783_v7 }
 0x214   : > { %v1291_v48 = vpop.f32.mrf.mxu1 }
 0x215   : > { %v1219_v49 = vpack.c.bf16 %v904_v47, %v901_v46  ;;  %v1292_v51 = vadd.f32 %v1291_v48, %v1290_v45 }
 0x216   : > { %v1293_v50 = vpop.f32.mrf.mxu1 }
 0x217   : > { %1235 = vst [vmem:[%s1789_s30 + $0x28] sm:$0xff] %v1219_v49   ;;  %v909_v55 = vadd.f32 %v1292_v51, %v1783_v7 }
 0x218   : > { %v1294_v52 = vpop.f32.mrf.mxu1 }
 0x219   : > { %v1295_v53 = vadd.f32 %v1294_v52, %v1293_v50 }
 0x21a   : > { %v1296_v54 = vpop.f32.mrf.mxu1 }
 0x21b   : > { %v912_v56 = vadd.f32 %v1295_v53, %v1783_v7 }
 0x21c   : > { %v1297_v57 = vpop.f32.mrf.mxu1 }
 0x21d   : > { %v1224_v58 = vpack.c.bf16 %v912_v56, %v909_v55  ;;  %v1298_v60 = vadd.f32 %v1297_v57, %v1296_v54 }
 0x21e   : > { %v1299_v59 = vpop.f32.mrf.mxu1 }
 0x21f   : > { %1236 = vst [vmem:[%s1789_s30 + $0x30] sm:$0xff] %v1224_v58   ;;  %v917_v62 = vadd.f32 %v1298_v60, %v1783_v7 }
 0x220   : > { %v1300_v6 = vpop.f32.mrf.mxu1 }
 0x221   : > { %v1301_v61 = vadd.f32 %v1300_v6, %v1299_v59 }
 0x223   : > { %v920_v63 = vadd.f32 %v1301_v61, %v1783_v7 }
 0x225   : > { %v1229_v0 = vpack.c.bf16 %v920_v63, %v917_v62 }
 0x227   : > { %1237 = vst [vmem:[%s1789_s30 + $0x38] sm:$0xff] %v1229_v0  }
 0x228   : > { %1444 = shalt.err (!%p1441_p3)
}
 0x229   : > { %s1445_s13 = scalar_lea.hbm %s1817_s9, 1024  ;;  %s1449_s17 = scalar_lea.hbm %s1869_s5, 2048 }
 0x22a   : > { %p1446_p4 = scmp.ne.s32.totalorder %s1817_s9, %s1445_s13  ;;  %p1450_p9 = scmp.lt.s32.totalorder %s1817_s9, %s1869_s5 }
 0x22b   : > { %p1451_p10 = scmp.lt.s32.totalorder %s1449_s17, %s1445_s13 }
 0x22c   : > { %p1447_p7 = pnand %p1446_p4, %p1564_p5 }
 0x22d   : > { %p1452_p11 = por %p1451_p10, %p1450_p9 }
 0x22e   : > { %p1448_p8 = pneg %p1447_p7 }
 0x230   : > { %p1453_p12 = pnand %p1452_p11, %p1448_p8 }
 0x232   : > { %1456 = shalt.err (!%p1453_p12)
}
 0x233   : > { %s1494_s30 = smov 64   ;;  %s1495_s15 = smov 4  }
 0x234   : > { %1302 = dma.vmem_to_hbm [thread:$0]  (%p1564_p5), %s1819_s6, 1024, %s1817_s9, %s1824_s23, %s1494_s30, %s1494_s30, %s1495_s15  }
 0x235 PF: > { %p1308_p13 = scmp.ge.s32.totalorder %s1491_s21, 2  ;;  %s1032_s7 = sand.u32 1, %s1479_s18  }
 0x236   : > { %s1033_s8 = scalar_lea.sflag [#allocation3], %s1032_s7 }
 0x237   : > { %p1305_p0 = pnand %p1308_p13, %p1568_p6 }
 0x239   : > { %p1306_p1 = pneg %p1305_p0 }
 0x23b   : > { %1474 = dma.done.wait (%p1306_p1), %s1033_s8, 1024  }
 0x23c   : > { %1476 = vsyncadd (%p1306_p1), %s1033_s8, 4294966272  ;;  %p15_p2 = scmp.ge.s32.totalorder %s1551_s24, 4   ;;  %s1872_s18 = smov %s1483_s19 }
 0x23d   : > { %s1873_s19 = smov %s1487_s20  ;;  %s1874_s20 = smov %s1562_s27 }
 0x23e   : > { %s1875_s21 = smov %s1551_s24  ;;  %17 = sbr.rel (!%p15_p2) target bundleno = 3 (0x3), region = 75 }
 0x243   :  { %1038 = vsyncpa [#allocation3], 1 }
 0x244   :  { %1040 = vsyncpa [#allocation3 + $0x1], 1 }

</bundles_post_ra>
